<compile_context>
chip_gen: v7x
topology: tpu7x:2x2x1
jax: 0.10.0
libtpu: 0.0.40
codegen_flags: <defaults>
</compile_context>

<pallas_src>
import functools

import jax
import jax.numpy as jnp
import numpy as np
from jax.experimental import pallas as pl
from jax.experimental.pallas import tpu as pltpu


# ---------------------------------------------------------------------------
# Stage 1: backbone stem stand-in (1x1 conv + swish) + global average pool.
# ---------------------------------------------------------------------------
def _backbone_pool_kernel(x_ref,        # VMEM (Cin, tile_hw) f32   (batch squeezed)
                          convwT_ref,   # VMEM (D, Cin)        bf16
                          convb_ref,    # VMEM (D, 1)          f32
                          rep_ref,      # VMEM (D, 1)          f32  out (batch squeezed)
                          pool_acc,     # VMEM (D, 1)          f32  scratch
                          *, inv_hw):
    s = pl.program_id(1)                 # spatial-tile index (reduction axis, innermost)

    @pl.when(s == 0)
    def _():
        pool_acc[...] = jnp.zeros_like(pool_acc)

    # 1x1-conv stem stand-in, HW on lanes: (D, Cin) @ (Cin, tile_hw) -> (D, tile_hw).
    # x is consumed straight from its NCHW layout (no wrapper transpose/cast HBM
    # pass); the bf16 cast of the tile happens here in VMEM, free wrt HBM traffic.
    xb = x_ref[...].astype(jnp.bfloat16)
    h = jnp.dot(convwT_ref[...], xb,
                preferred_element_type=jnp.float32) + convb_ref[...]   # (D, tile) f32
    h = h * jax.nn.sigmoid(h)                                          # swish (EUP)

    # Global-average-pool partial sum over this spatial tile.
    # TODO(synk): at real EfficientNet D (~1280) move this reduce onto the idle
    # MXU via a ones(tile_hw, 1) contraction (perf-review item); at stand-in
    # D=64 the XLU reduce is nowhere near binding and the exact f32 chain keeps
    # the accuracy check tight.
    pool_acc[...] += jnp.sum(h, axis=1, keepdims=True)                 # (D, 1)

    @pl.when(s == pl.num_programs(1) - 1)
    def _():
        # _avg_pooling + flatten; base_net._dropout is identity in eval/no_grad.
        rep_ref[...] = pool_acc[...] * inv_hw


# ---------------------------------------------------------------------------
# Stage 2: tau-ensemble classifier head, batched over B (one GEMM, not B GEMVs).
# ---------------------------------------------------------------------------
def _tau_head_kernel(rep_ref,      # VMEM (B, D)   f32
                     fcT_ref,      # VMEM (D, Cp)  f32  base_net._fc.weight.T (class-padded)
                     scales_ref,   # VMEM (T, Cp)  f32  ||w_c||^{-tau_t}  (precomputed)
                     ensw_ref,     # VMEM (T, Cp)  f32  LocalLinear.weight[:, :, 0].T
                     ensb_ref,     # VMEM (1, Cp)  f32  LocalLinear.bias.T
                     out_ref):     # VMEM (B, Cp)  f32
    # The tau scaling is per class (per row of fc_w), so it factors out of the
    # matmul: one batched (B, D) @ (D, Cp) GEMM gives the shared base logits.
    base = jnp.dot(rep_ref[...], fcT_ref[...],
                   preferred_element_type=jnp.float32)                 # (B, Cp)

    # All taus vectorized at once: (T, B, Cp) swish, then the LocalLinear
    # per-class weighted sum over T (leading-axis adds, no Python tau loop).
    scaled = scales_ref[...][:, None, :] * base[None, :, :]            # (T, B, Cp)
    sw = scaled * jax.nn.sigmoid(scaled)                               # base_net._swish
    ens = jnp.sum(sw * ensw_ref[...][:, None, :], axis=0)              # (B, Cp)
    out_ref[...] = jnp.maximum(ens + ensb_ref[...], 0.0)               # + bias, nn.ReLU


def _pick_spatial_tile(hw, want):
    """Largest legal spatial tile <= `want`: multiple of 128 dividing HW, or HW."""
    want = max(128, min(want, hw))
    if hw % want == 0 and (want % 128 == 0 or want == hw):
        return want
    t = (min(want, hw) // 128) * 128
    while t >= 128:
        if hw % t == 0:
            return t
        t -= 128
    return hw


def tau_ensemble_forward(x_nchw, conv_w, conv_b, fc_w, tau_arr, ens_w, ens_b,
                         *, tile_hw=512):
    """x_nchw: (B, Cin, H, W) f32. Returns (B, num_classes) f32."""
    B, Cin, H, W = x_nchw.shape
    HW = H * W
    C, D = fc_w.shape
    T = int(tau_arr.shape[0])
    assert conv_w.shape == (Cin, D)

    tile = _pick_spatial_tile(HW, tile_hw)
    n_hw = HW // tile

    # ---- stage 1: backbone stem + swish + global average pool -> rep (B, D) ----
    # (B, Cin, H, W) -> (B, Cin, HW) is a free reshape: x is read once from HBM.
    x_k = x_nchw.reshape(B, Cin, HW)
    convwT = jnp.transpose(conv_w).astype(jnp.bfloat16)      # (D, Cin)  parameter-only
    convb_col = conv_b.reshape(D, 1).astype(jnp.float32)     # (D, 1)

    rep3 = pl.pallas_call(
        functools.partial(_backbone_pool_kernel, inv_hw=1.0 / HW),
        out_shape=jax.ShapeDtypeStruct((B, D, 1), jnp.float32),
        grid_spec=pltpu.PrefetchScalarGridSpec(
            num_scalar_prefetch=0,
            grid=(B, n_hw),                          # reduction (HW) axis innermost
            in_specs=[
                pl.BlockSpec((None, Cin, tile), lambda b, s: (b, 0, s)),   # x tile
                pl.BlockSpec((D, Cin), lambda b, s: (0, 0)),               # conv_w.T
                pl.BlockSpec((D, 1),   lambda b, s: (0, 0)),               # conv_b
            ],
            out_specs=pl.BlockSpec((None, D, 1), lambda b, s: (b, 0, 0)),  # rep column
            scratch_shapes=[pltpu.VMEM((D, 1), jnp.float32)],              # pool acc
        ),
        # Batch axis "parallel" -> splits across the 2 TCs on v7x (keep B >= 2);
        # spatial axis "arbitrary" (pool reduction). At real sizes also set
        # vmem_limit_bytes explicitly for v7x's 64 MiB VMEM.
        compiler_params=pltpu.CompilerParams(
            dimension_semantics=("parallel", "arbitrary")),
    )(x_k, convwT, convb_col)

    rep = rep3.reshape(B, D)        # tiny (B*D) relayout between the two calls

    # ---- stage 2: tau-ensemble classifier head ----
    # Parameter-only precompute (mirrors PyTorch's self.normB in __init__), with an
    # epsilon clamp so a zero-norm fc row cannot produce inf/NaN scales.
    normB = jnp.sqrt(jnp.maximum(jnp.sum(fc_w * fc_w, axis=1), 1e-24))   # (C,)
    scales = normB[None, :] ** (-tau_arr[:, None])                       # (T, C)

    Cp = ((C + 127) // 128) * 128   # lane-pad the class axis -> unmasked stores
    fcT_p = jnp.zeros((D, Cp), jnp.float32).at[:, :C].set(jnp.transpose(fc_w))
    scales_p = jnp.zeros((T, Cp), jnp.float32).at[:, :C].set(scales.astype(jnp.float32))
    ensw_p = jnp.zeros((T, Cp), jnp.float32).at[:, :C].set(jnp.transpose(ens_w[:, :, 0]))
    ensb_p = jnp.zeros((1, Cp), jnp.float32).at[:, :C].set(ens_b[:, 0][None, :])

    vmem = pl.BlockSpec(memory_space=pltpu.MemorySpace.VMEM)
    out_p = pl.pallas_call(
        _tau_head_kernel,
        out_shape=jax.ShapeDtypeStruct((B, Cp), jnp.float32),
        in_specs=[vmem, vmem, vmem, vmem, vmem],
        out_specs=vmem,
    )(rep, fcT_p, scales_p, ensw_p, ensb_p)

    return out_p[:, :C]             # strip the class padding


def reference_forward(x_nchw, conv_w, conv_b, fc_w, tau_arr, ens_w, ens_b):
    """Pure-JAX reference mirroring the PyTorch forward (same bf16 stem operands)."""
    B, Cin, H, W = x_nchw.shape
    xl = jnp.transpose(x_nchw, (0, 2, 3, 1)).reshape(B, H * W, Cin).astype(jnp.bfloat16)
    h = jnp.einsum('bpc,cd->bpd', xl, conv_w.astype(jnp.bfloat16),
                   preferred_element_type=jnp.float32) + conv_b[None, None, :]
    h = h * jax.nn.sigmoid(h)
    rep = jnp.mean(h, axis=1)                               # avg pool + flatten
    normB = jnp.linalg.norm(fc_w, axis=1)
    logits = []
    for t in range(tau_arr.shape[0]):
        Wt = fc_w / (normB ** tau_arr[t])[:, None]
        l = rep @ Wt.T
        logits.append(l * jax.nn.sigmoid(l))                # swish
    ens = jnp.stack(logits, axis=-1)                        # dstack -> (B, C, T)
    out = jnp.sum(ens * ens_w[None, :, :, 0], axis=-1) + ens_b[:, 0][None, :]
    return jax.nn.relu(out)


if __name__ == "__main__":
    # small, deterministic shapes (B >= 2 so the "parallel" batch axis can split)
    B, Cin, H, W = 2, 4, 16, 16
    D = 64                 # stand-in backbone feature dim
    NUM_CLASSES = 50       # matches torch.zeros(50) bias in the module
    TAUS = jnp.array([0.5, 1.0, 1.5, 2.0], dtype=jnp.float32)
    T = int(TAUS.shape[0])

    key = jax.random.PRNGKey(0)
    k = jax.random.split(key, 6)
    x = jax.random.normal(k[0], (B, Cin, H, W), dtype=jnp.float32)       # NCHW input
    conv_w = jax.random.normal(k[1], (Cin, D), dtype=jnp.float32) * 0.1  # stem stand-in
    conv_b = jax.random.normal(k[2], (D,), dtype=jnp.float32) * 0.1
    fc_w = jax.random.normal(k[3], (NUM_CLASSES, D), dtype=jnp.float32)  # base_net._fc.weight
    ens_w = jax.random.normal(k[4], (NUM_CLASSES, T, 1), dtype=jnp.float32)  # LocalLinear (init_val=None)
    ens_b = jax.random.normal(k[5], (NUM_CLASSES, 1), dtype=jnp.float32)

    out = tau_ensemble_forward(x, conv_w, conv_b, fc_w, TAUS, ens_w, ens_b)
    out = jax.block_until_ready(out)

    ref = reference_forward(x, conv_w, conv_b, fc_w, TAUS, ens_w, ens_b)
    np.testing.assert_allclose(np.asarray(out), np.asarray(ref), rtol=2e-4, atol=2e-4)
    assert out.shape == (B, NUM_CLASSES)
    print("KERNEL_OK")
</pallas_src>

<mosaic_0001>
module attributes {stable_mosaic.version = 11 : i64} {
  func.func @_backbone_pool_kernel(%arg0: i32, %arg1: i32, %arg2: memref<1x4x256xf32, #tpu.memory_space<vmem>>, %arg3: memref<64x4xbf16, #tpu.memory_space<vmem>>, %arg4: memref<64x1xf32, #tpu.memory_space<vmem>>, %arg5: memref<1x64x1xf32, #tpu.memory_space<vmem>>, %arg6: memref<64x1xf32, #tpu.memory_space<vmem>>) attributes {dimension_semantics = [#tpu.dimension_semantics<parallel>, #tpu.dimension_semantics<arbitrary>], iteration_bounds = array<i64: 2, 1>, scalar_prefetch = 0 : i64, scratch_operands = 1 : i64, tpu.core_type = #tpu.core_type<tc>, window_params = [{transform_indices = @transform_0, window_bounds = array<i64: 1, 4, 256>}, {pipeline_mode = #tpu.pipeline_mode<synchronous>, transform_indices = @transform_1, window_bounds = array<i64: 64, 4>}, {pipeline_mode = #tpu.pipeline_mode<synchronous>, transform_indices = @transform_2, window_bounds = array<i64: 64, 1>}, {transform_indices = @transform_3, window_bounds = array<i64: 1, 64, 1>}]} {
    %c0_i32 = arith.constant 0 : i32
    %0 = arith.cmpi eq, %arg1, %c0_i32 : i32
    %1 = arith.extui %0 : i1 to i32
    %c0_i32_0 = arith.constant 0 : i32
    %2 = arith.cmpi ne, %1, %c0_i32_0 : i32
    scf.if %2 {
      %cst_15 = arith.constant 0.000000e+00 : f32
      %25 = vector.broadcast %cst_15 : f32 to vector<64x1xf32>
      %c0_16 = arith.constant 0 : index
      %c0_17 = arith.constant 0 : index
      %26 = vector.load %arg6[%c0_16, %c0_17] : memref<64x1xf32, #tpu.memory_space<vmem>>, vector<64x1xf32>
      tpu.vector_store %arg6[%c0_16, %c0_17], %25 {strides = array<i32>} : memref<64x1xf32, #tpu.memory_space<vmem>>, vector<64x1xf32>,
    } else {
    }
    %c0 = arith.constant 0 : index
    %c0_1 = arith.constant 0 : index
    %c0_2 = arith.constant 0 : index
    %3 = vector.load %arg2[%c0, %c0_1, %c0_2] : memref<1x4x256xf32, #tpu.memory_space<vmem>>, vector<1x4x256xf32>
    %4 = vector.shape_cast %3 : vector<1x4x256xf32> to vector<4x256xf32>
    %5 = arith.truncf %4 : vector<4x256xf32> to vector<4x256xbf16>
    %c0_3 = arith.constant 0 : index
    %c0_4 = arith.constant 0 : index
    %6 = vector.load %arg3[%c0_3, %c0_4] : memref<64x4xbf16, #tpu.memory_space<vmem>>, vector<64x4xbf16>
    %cst = arith.constant dense<0.000000e+00> : vector<64x256xf32>
    %7 = tpu.matmul %6, %5, %cst {dimension_numbers = #tpu.dot_dimension_numbers<[1], [0], [0], [1], [0, 0, 1, 1], [], []>} : vector<64x4xbf16>, vector<4x256xbf16>, vector<64x256xf32> -> vector<64x256xf32>
    %c0_5 = arith.constant 0 : index
    %c0_6 = arith.constant 0 : index
    %8 = vector.load %arg4[%c0_5, %c0_6] : memref<64x1xf32, #tpu.memory_space<vmem>>, vector<64x1xf32>
    %9 = vector.broadcast %8 : vector<64x1xf32> to vector<64x256xf32>
    %10 = arith.addf %7, %9 : vector<64x256xf32>
    %11 = arith.negf %10 : vector<64x256xf32>
    %12 = math.exp %11 : vector<64x256xf32>
    %cst_7 = arith.constant 1.000000e+00 : f32
    %13 = vector.broadcast %cst_7 : f32 to vector<64x256xf32>
    %14 = arith.addf %13, %12 : vector<64x256xf32>
    %15 = arith.divf %13, %14 : vector<64x256xf32>
    %16 = arith.mulf %10, %15 : vector<64x256xf32>
    %c0_8 = arith.constant 0 : index
    %c0_9 = arith.constant 0 : index
    %17 = vector.load %arg6[%c0_8, %c0_9] : memref<64x1xf32, #tpu.memory_space<vmem>>, vector<64x1xf32>
    %cst_10 = arith.constant dense<0.000000e+00> : vector<64xf32>
    %18 = vector.multi_reduction <add>, %16, %cst_10 [1] : vector<64x256xf32> to vector<64xf32>
    %19 = vector.shape_cast %18 : vector<64xf32> to vector<64x1xf32>
    %20 = arith.addf %17, %19 : vector<64x1xf32>
    %c0_11 = arith.constant 0 : index
    %c0_12 = arith.constant 0 : index
    %21 = vector.load %arg6[%c0_11, %c0_12] : memref<64x1xf32, #tpu.memory_space<vmem>>, vector<64x1xf32>
    tpu.vector_store %arg6[%c0_11, %c0_12], %20 {strides = array<i32>} : memref<64x1xf32, #tpu.memory_space<vmem>>, vector<64x1xf32>,
    %c0_i32_13 = arith.constant 0 : i32
    %22 = arith.cmpi eq, %arg1, %c0_i32_13 : i32
    %23 = arith.extui %22 : i1 to i32
    %c0_i32_14 = arith.constant 0 : i32
    %24 = arith.cmpi ne, %23, %c0_i32_14 : i32
    scf.if %24 {
      %c0_15 = arith.constant 0 : index
      %c0_16 = arith.constant 0 : index
      %25 = vector.load %arg6[%c0_15, %c0_16] : memref<64x1xf32, #tpu.memory_space<vmem>>, vector<64x1xf32>
      %cst_17 = arith.constant 3.906250e-03 : f32
      %26 = vector.broadcast %cst_17 : f32 to vector<64x1xf32>
      %27 = arith.mulf %25, %26 : vector<64x1xf32>
      %c0_18 = arith.constant 0 : index
      %c0_19 = arith.constant 0 : index
      %c0_20 = arith.constant 0 : index
      %28 = vector.load %arg5[%c0_18, %c0_19, %c0_20] : memref<1x64x1xf32, #tpu.memory_space<vmem>>, vector<1x64x1xf32>
      %29 = vector.shape_cast %28 : vector<1x64x1xf32> to vector<64x1xf32>
      %30 = vector.shape_cast %27 : vector<64x1xf32> to vector<1x64x1xf32>
      tpu.vector_store %arg5[%c0_18, %c0_19, %c0_20], %30 {strides = array<i32>} : memref<1x64x1xf32, #tpu.memory_space<vmem>>, vector<1x64x1xf32>,
    } else {
    }
    return
  }
  func.func @transform_0(%arg0: i32, %arg1: i32) -> (i32, i32, i32) {
    %c0_i32 = arith.constant 0 : i32
    %c0_i32_0 = arith.constant 0 : i32
    return %arg0, %c0_i32, %arg1 : i32, i32, i32
  }
  func.func @transform_1(%arg0: i32, %arg1: i32) -> (i32, i32) {
    %c0_i32 = arith.constant 0 : i32
    %c0_i32_0 = arith.constant 0 : i32
    %c0_i32_1 = arith.constant 0 : i32
    return %c0_i32, %c0_i32_0 : i32, i32
  }
  func.func @transform_2(%arg0: i32, %arg1: i32) -> (i32, i32) {
    %c0_i32 = arith.constant 0 : i32
    %c0_i32_0 = arith.constant 0 : i32
    %c0_i32_1 = arith.constant 0 : i32
    return %c0_i32, %c0_i32_0 : i32, i32
  }
  func.func @transform_3(%arg0: i32, %arg1: i32) -> (i32, i32, i32) {
    %c0_i32 = arith.constant 0 : i32
    %c0_i32_0 = arith.constant 0 : i32
    %c0_i32_1 = arith.constant 0 : i32
    return %arg0, %c0_i32, %c0_i32_0 : i32, i32, i32
  }
}

</mosaic_0001>

<bundles_post_ra>
// kernel: tpu_custom_call.1
= control target key start
LH: loop header
LB: loop body
LE: loop exit
PB: predicated region body
PF: predicated region fallthrough
CT: control target
= control target key end

     0   :  { %s828_s12 = smov 0   ;;  %s830_s13 = smov 0   ;;  %s1003_s0 = inlined_call_operand.vmem [shape: f32[2,4,256], index: 0, kind: input, shape index: {}]   ;;  %s1004_s1 = inlined_call_operand.vmem [shape: bf16[64,4], index: 1, kind: input, shape index: {}]   ;;  %s1005_s2 = inlined_call_operand.vmem [shape: f32[64,1], index: 2, kind: input, shape index: {}]   ;;  %s1006_s3 = inlined_call_operand.vmem [shape: f32[2,64,1], index: 3, kind: output, shape index: {}]  }
   0x1   :  { %s832_s14 = smov 0  }
   0x2 LB: > { %s25_s15 = sadd.s32 1, %s800_s13  ;;  %p649_p0 = scmp.ge.s32.totalorder %s804_s14, 1  ;;  %s804_s14 = sphi %s832_s14, %s13_s14   ;;  %s800_s13 = sphi %s830_s13, %s1008_s13   ;;  %s796_s12 = sphi %s828_s12, %s1007_s12  }
   0x3   : > { %p27_p1 = scmp.ge.s32.totalorder %s25_s15, 2  ;;  %p156_p2 = scmp.lt.s32.totalorder %s804_s14, 3 }
   0x5   : > { %s1010_s15 = smov (%p27_p1, %s25_s15), 0  ;;  %p157_p3 = pnand %p649_p0, %p156_p2 }
   0x6   : > { %p185_p4 = scmp.lt.s32.totalorder (!%p157_p3), %s796_s12, 1  ;;  %v806_v0 = vmov (!%p157_p3), 0   ;;  %v229_v1 = vld [vmem:[%s1005_s2 + $0x10] sm:$0xff] (!%p157_p3)  ;;  %v227_v2 = vld [vmem:[%s1005_s2] sm:$0xff] (!%p157_p3)  ;;  %vm308_vm0 = vcmask (!%p157_p3), 1041408   ;;  %v230_v4 = vld [vmem:[%s1005_s2 + $0x18] sm:$0xff] (!%p157_p3) }
   0x7   : > { %160 = sbr.rel (%p157_p3) target bundleno = 455 (0x1c7), region = 32  ;;  %347 = vmatprep.mubr.bf16.mxu0 (!%p157_p3), %v806_v0  ;;  %367 = vmatprep.mubr.bf16.mxu1 (!%p157_p3), %v806_v0  ;;  %v228_v7 = vld [vmem:[%s1005_s2 + $0x8] sm:$0xff] (!%p157_p3)  ;;  %v714_v11 = vld [vmem:[%s1004_s1] sm:$0xff] (!%p157_p3)   ;;  %v715_v12 = vld [vmem:[%s1004_s1 + $0x10] sm:$0xff] (!%p157_p3)   ;;  %vm295_vm1 = vcmask (!%p157_p3), 31744   ;;  %vm204_vm2 = vcmask (!%p157_p3), 7168  }
   0x8   : > { %712 = vset.pattern.permute.xlu1 (!%p157_p3), %v806_v0  ;;  %711 = vset.pattern.permute.xlu0 (!%p157_p3), %v806_v0  ;;  %v232_v10 = vld [vmem:[%s1005_s2 + $0x28] sm:$0xff] (!%p157_p3)  ;;  %v231_v13 = vld [vmem:[%s1005_s2 + $0x20] sm:$0xff] (!%p157_p3)  ;;  %v234_v14 = vld [vmem:[%s1005_s2 + $0x38] sm:$0xff] (!%p157_p3)  ;;  %v807_v18 = vmov (!%p157_p3), 0.0  }
   0x9   : > { %247 = vperm.xlu1 (!%p157_p3), %712, %v229_v1   ;;  %237 = vperm.xlu0 (!%p157_p3), %711, %v227_v2   ;;  %v233_v15 = vld [vmem:[%s1005_s2 + $0x30] sm:$0xff] (!%p157_p3)  ;;  %v716_v16 = vld [vmem:[%s1004_s1 + $0x8] sm:$0xff] (!%p157_p3)   ;;  %v717_v17 = vld [vmem:[%s1004_s1 + $0x18] sm:$0xff] (!%p157_p3)   ;;  %209 = vst.msk [vmem:[#allocation2 + $0x20] sm:$0xff] (!%p157_p3), %vm204_vm2, %v807_v18 }
   0xa   : > { %205 = vst.msk [vmem:[#allocation2] sm:$0xff] (!%p157_p3), %vm204_vm2, %v807_v18  ;;  %206 = vst.msk [vmem:[#allocation2 + $0x8] sm:$0xff] (!%p157_p3), %vm204_vm2, %v807_v18 }
   0xb   : > { %207 = vst.msk [vmem:[#allocation2 + $0x10] sm:$0xff] (!%p157_p3), %vm204_vm2, %v807_v18  ;;  %208 = vst.msk [vmem:[#allocation2 + $0x18] sm:$0xff] (!%p157_p3), %vm204_vm2, %v807_v18 }
   0xc   : > { %210 = vst.msk [vmem:[#allocation2 + $0x28] sm:$0xff] (!%p157_p3), %vm204_vm2, %v807_v18  ;;  %211 = vst.msk [vmem:[#allocation2 + $0x30] sm:$0xff] (!%p157_p3), %vm204_vm2, %v807_v18 }
   0xd   : > { %252 = vperm.xlu1 (!%p157_p3), %712, %v230_v4   ;;  %242 = vperm.xlu0 (!%p157_p3), %711, %v228_v7   ;;  %212 = vst.msk [vmem:[#allocation2 + $0x38] sm:$0xff] (!%p157_p3), %vm204_vm2, %v807_v18 }
   0xe   : > { %s1012_s12 = smov (!%p185_p4, %s796_s12), 1 }
   0xf   : > { %s681_s16 = sshll.u32 %s1012_s12, 3 }
  0x10   : > { %s192_s21 = scalar_lea.vmem %s1003_s0, %s681_s16 }
  0x11   : > { %v213_v3 = vld [vmem:[%s192_s21] sm:$0xff]  ;;  %262 = vperm.xlu1 %712, %v232_v10   ;;  %257 = vperm.xlu0 %711, %v231_v13   ;;  %s682_s21 = sshll.u32 %s1012_s12, 6 }
  0x12   : > { %v215_v5 = vcombine.high %v213_v3, %v213_v3  ;;  %v217_v6 = vpack.c.bf16 %v213_v3, %v213_v3  ;;  %s972_s24 = scalar_lea.vmem %s1006_s3, %s682_s21 }
  0x14   : > { %v218_v8 = vpack.c.bf16 %v215_v5, %v215_v5  ;;  %v310_v9 = vsel %vm308_vm0, %v217_v6, 0 }
  0x15   : > { %272 = vperm.xlu1 %712, %v234_v14   ;;  %267 = vperm.xlu0 %711, %v233_v15  }
  0x16   : > { %658 = vmatprep.subr.msk.bf16.mxu0 %vm308_vm0, %v218_v8  ;;  %683 = vmatprep.subr.msk.bf16.mxu1 %vm308_vm0, %v218_v8 }
  0x17   : > { %316 = vmatpush1.bf16.msra.mxu0 %v310_v9  ;;  %684 = vmatpush1.bf16.msra.mxu1 %v310_v9 }
  0x1a   : > { %659 = vmatmul.mubr.msk.bf16.vlgmr.msra.gmra.mrb[0].mxu0 %vm295_vm1, %v714_v11  ;;  %661 = vmatmul.mubr.msk.bf16.vlgmr.msra.gmra.mrb[0].mxu1 %vm295_vm1, %v715_v12 }
  0x1b   : > { %357 = vmatprep.mubr.bf16.mxu0 %v806_v0  ;;  %377 = vmatprep.mubr.bf16.mxu1 %v806_v0 }
  0x22   : > { %660 = vmatmul.mubr.msk.bf16.gmra.mrb[4].mxu0 %vm295_vm1, %v716_v16  ;;  %662 = vmatmul.mubr.msk.bf16.gmra.mrb[4].mxu1 %vm295_vm1, %v717_v17 }
  0x88   : > { %v248_v19 = vpop.permute.xlu1 %247  ;;  %v238_v20 = vpop.permute.xlu0 %237 }
  0x8c   : > { %v896_v21 = vpop.permute.xlu1 %252  ;;  %v243_v22 = vpop.permute.xlu0 %242 }
  0x90   : > { %v263_v23 = vpop.permute.xlu1 %262  ;;  %v258_v24 = vpop.permute.xlu0 %257 }
  0x94   : > { %v268_v47 = vpop.permute.xlu0 %267  ;;  %v273_v18 = vpop.permute.xlu1 %272 }
  0xed   : > { %v349_v25 = vpop.f32.mrb[0].mxu0  ;;  %v369_v26 = vpop.f32.mrb[0].mxu1 }
  0xee   : > { %v898_v27 = vadd.f32 %v349_v25, %v238_v20  ;;  %v900_v28 = vadd.f32 %v369_v26, %v258_v24  ;;  %v351_v29 = vpop.f32.mrb[1].mxu0  ;;  %v371_v30 = vpop.f32.mrb[1].mxu1 }
  0xef   : > { %v902_v31 = vadd.f32 %v351_v29, %v238_v20  ;;  %v904_v32 = vadd.f32 %v371_v30, %v258_v24  ;;  %v353_v33 = vpop.f32.mrb[2].mxu0  ;;  %v373_v34 = vpop.f32.mrb[2].mxu1 }
  0xf0   : > { %v663_v35 = vmul.f32 -1.442695, %v898_v27  ;;  %v671_v36 = vmul.f32 -1.442695, %v900_v28  ;;  %v908_v37 = vadd.f32 %v353_v33, %v243_v22  ;;  %v910_v38 = vadd.f32 %v373_v34, %v263_v23  ;;  %v355_v39 = vpop.f32.mrb[3].mxu0  ;;  %v375_v40 = vpop.f32.mrb[3].mxu1 }
  0xf1   : > { %v664_v41 = vmul.f32 -1.442695, %v902_v31  ;;  %v672_v42 = vmul.f32 -1.442695, %v904_v32  ;;  %v914_v43 = vadd.f32 %v355_v39, %v243_v22  ;;  %v916_v44 = vadd.f32 %v375_v40, %v263_v23 }
  0xf2   : > { %718 = vpow2.f32 %v663_v35  ;;  %v665_v45 = vmul.f32 -1.442695, %v908_v37  ;;  %v673_v46 = vmul.f32 -1.442695, %v910_v38 }
  0xf3   : > { %720 = vpow2.f32 %v671_v36  ;;  %v666_v48 = vmul.f32 -1.442695, %v914_v43  ;;  %v674_v49 = vmul.f32 -1.442695, %v916_v44 }
  0xf4   : > { %722 = vpow2.f32 %v664_v41 }
  0xf5   : > { %724 = vpow2.f32 %v672_v42  ;;  %v359_v50 = vpop.f32.mrb[4].mxu0  ;;  %v379_v51 = vpop.f32.mrb[4].mxu1 }
  0xf6   : > { %726 = vpow2.f32 %v665_v45  ;;  %v922_v52 = vadd.f32 %v359_v50, %v248_v19  ;;  %v924_v53 = vadd.f32 %v379_v51, %v268_v47  ;;  %v361_v54 = vpop.f32.mrb[5].mxu0  ;;  %v381_v55 = vpop.f32.mrb[5].mxu1 }
  0xf7   : > { %728 = vpow2.f32 %v673_v46  ;;  %v926_v56 = vadd.f32 %v361_v54, %v248_v19  ;;  %v928_v57 = vadd.f32 %v381_v55, %v268_v47  ;;  %v363_v58 = vpop.f32.mrb[6].mxu0  ;;  %v383_v59 = vpop.f32.mrb[6].mxu1 }
  0xf8   : > { %730 = vpow2.f32 %v666_v48  ;;  %v667_v60 = vmul.f32 -1.442695, %v922_v52  ;;  %v675_v61 = vmul.f32 -1.442695, %v924_v53  ;;  %v933_v62 = vadd.f32 %v363_v58, %v896_v21  ;;  %v365_v63 = vpop.f32.mrb[7].mxu0  ;;  %v385_v0 = vpop.f32.mrb[7].mxu1 }
  0xf9   : > { %732 = vpow2.f32 %v674_v49  ;;  %v668_v1 = vmul.f32 -1.442695, %v926_v56  ;;  %v676_v2 = vmul.f32 -1.442695, %v928_v57  ;;  %v938_v23 = vadd.f32 %v383_v59, %v273_v18 }
  0xfa   : > { %734 = vpow2.f32 %v667_v60  ;;  %v669_v3 = vmul.f32 -1.442695, %v933_v62  ;;  %v941_v26 = vadd.f32 %v365_v63, %v896_v21  ;;  %v943_v33 = vadd.f32 %v385_v0, %v273_v18 }
  0xfb   : > { %736 = vpow2.f32 %v675_v61  ;;  %v677_v40 = vmul.f32 -1.442695, %v938_v23 }
  0xfc   : > { %v719_v4 = vpop.eup %718  ;;  %738 = vpow2.f32 %v668_v1  ;;  %v670_v42 = vmul.f32 -1.442695, %v941_v26  ;;  %v678_v46 = vmul.f32 -1.442695, %v943_v33 }
  0xfd   : > { %v721_v5 = vpop.eup %720  ;;  %v436_v6 = vadd.f32 1.0, %v719_v4  ;;  %740 = vpow2.f32 %v676_v2 }
  0xfe   : > { %v723_v7 = vpop.eup %722  ;;  %v444_v8 = vadd.f32 1.0, %v721_v5  ;;  %742 = vpow2.f32 %v669_v3 }
  0xff   : > { %v725_v9 = vpop.eup %724  ;;  %744 = vrcp.f32 %v436_v6  ;;  %v437_v10 = vadd.f32 1.0, %v723_v7 }
 0x100   : > { %v727_v11 = vpop.eup %726  ;;  %746 = vrcp.f32 %v444_v8  ;;  %v445_v12 = vadd.f32 1.0, %v725_v9 }
 0x101   : > { %v729_v13 = vpop.eup %728  ;;  %748 = vrcp.f32 %v437_v10  ;;  %v438_v14 = vadd.f32 1.0, %v727_v11 }
 0x102   : > { %v731_v15 = vpop.eup %730  ;;  %750 = vrcp.f32 %v445_v12  ;;  %v446_v16 = vadd.f32 1.0, %v729_v13 }
 0x103   : > { %v733_v17 = vpop.eup %732  ;;  %752 = vrcp.f32 %v438_v14  ;;  %v439_v19 = vadd.f32 1.0, %v731_v15 }
 0x104   : > { %v735_v20 = vpop.eup %734  ;;  %754 = vrcp.f32 %v446_v16  ;;  %v447_v22 = vadd.f32 1.0, %v733_v17 }
 0x105   : > { %v737_v24 = vpop.eup %736  ;;  %756 = vrcp.f32 %v439_v19  ;;  %v440_v25 = vadd.f32 1.0, %v735_v20  ;;  %v500_v20 = vld [vmem:[#allocation2] sm:$0xff] }
 0x106   : > { %v739_v29 = vpop.eup %738  ;;  %758 = vrcp.f32 %v447_v22  ;;  %v448_v30 = vadd.f32 1.0, %v737_v24  ;;  %v504_v22 = vld [vmem:[#allocation2 + $0x20] sm:$0xff] }
 0x107   : > { %v741_v34 = vpop.eup %740  ;;  %760 = vrcp.f32 %v440_v25  ;;  %v441_v35 = vadd.f32 1.0, %v739_v29 }
 0x108   : > { %v743_v36 = vpop.eup %742  ;;  %762 = vrcp.f32 %v448_v30  ;;  %v449_v39 = vadd.f32 1.0, %v741_v34 }
 0x109   : > { %v745_v41 = vpop.eup %744  ;;  %764 = vrcp.f32 %v441_v35  ;;  %v442_v2 = vadd.f32 1.0, %v743_v36  ;;  %v506_v36 = vld [vmem:[#allocation2 + $0x30] sm:$0xff] }
 0x10a   : > { %v747_v45 = vpop.eup %746  ;;  %v484_v21 = vmul.f32 %v745_v41, %v898_v27  ;;  %766 = vrcp.f32 %v449_v39  ;;  %v502_v39 = vld [vmem:[#allocation2 + $0x10] sm:$0xff] }
 0x10b   : > { %v749_v47 = vpop.eup %748  ;;  %v492_v48 = vmul.f32 %v747_v45, %v900_v28  ;;  %768 = vpow2.f32 %v677_v40 }
 0x10c   : > { %v751_v49 = vpop.eup %750  ;;  %v485_v50 = vmul.f32 %v749_v47, %v902_v31  ;;  %770 = vpow2.f32 %v670_v42 }
 0x10d   : > { %v753_v51 = vpop.eup %752  ;;  %v493_v54 = vmul.f32 %v751_v49, %v904_v32  ;;  %772 = vpow2.f32 %v678_v46 }
 0x10e   : > { %v755_v55 = vpop.eup %754  ;;  %v486_v58 = vmul.f32 %v753_v51, %v908_v37  ;;  %v508_v59 = vadd.f32 %v485_v50, %v484_v21  ;;  %774 = vrcp.f32 %v442_v2 }
 0x10f   : > { %v757_v27 = vpop.eup %756  ;;  %v494_v60 = vmul.f32 %v755_v55, %v910_v38  ;;  %v520_v61 = vadd.f32 %v493_v54, %v492_v48 }
 0x110   : > { %v759_v63 = vpop.eup %758  ;;  %v487_v28 = vmul.f32 %v757_v27, %v914_v43  ;;  %509 = vadd.xlane.f32.xlu0 %v508_v59 }
 0x111   : > { %v761_v0 = vpop.eup %760  ;;  %v495_v31 = vmul.f32 %v759_v63, %v916_v44  ;;  %521 = vadd.xlane.f32.xlu1 %v520_v61 }
 0x112   : > { %v763_v1 = vpop.eup %762  ;;  %v488_v32 = vmul.f32 %v761_v0, %v922_v52  ;;  %v511_v3 = vadd.f32 %v487_v28, %v486_v58  ;;  %v507_v28 = vld [vmem:[#allocation2 + $0x38] sm:$0xff] }
 0x113   : > { %v765_v37 = vpop.eup %764  ;;  %v496_v4 = vmul.f32 %v763_v1, %v924_v53  ;;  %v523_v5 = vadd.f32 %v495_v31, %v494_v60  ;;  %v503_v60 = vld [vmem:[#allocation2 + $0x18] sm:$0xff] }
 0x114   : > { %v767_v6 = vpop.eup %766  ;;  %v489_v38 = vmul.f32 %v765_v37, %v926_v56 }
 0x115   : > { %v497_v7 = vmul.f32 %v767_v6, %v928_v57  ;;  %512 = vadd.xlane.f32.xlu1 %v511_v3  ;;  %524 = vadd.xlane.f32.xlu0 %v523_v5  ;;  %v769_v43 = vpop.eup %768 }
 0x116   : > { %v514_v44 = vadd.f32 %v489_v38, %v488_v32  ;;  %v771_v8 = vpop.eup %770  ;;  %v450_v9 = vadd.f32 1.0, %v769_v43 }
 0x117   : > { %v526_v10 = vadd.f32 %v497_v7, %v496_v4  ;;  %v773_v52 = vpop.eup %772  ;;  %v443_v11 = vadd.f32 1.0, %v771_v8 }
 0x118   : > { %776 = vrcp.f32 %v450_v9  ;;  %v451_v12 = vadd.f32 1.0, %v773_v52  ;;  %v775_v53 = vpop.eup %774 }
 0x119   : > { %527 = vadd.xlane.f32.xlu1 %v526_v10  ;;  %515 = vadd.xlane.f32.xlu0 %v514_v44  ;;  %778 = vrcp.f32 %v443_v11  ;;  %v490_v57 = vmul.f32 %v775_v53, %v933_v62  ;;  %v501_v62 = vld [vmem:[#allocation2 + $0x8] sm:$0xff] }
 0x11a   : > { %780 = vrcp.f32 %v451_v12 }
 0x122   : > { %v777_v56 = vpop.eup %776 }
 0x123   : > { %v779_v13 = vpop.eup %778  ;;  %v498_v14 = vmul.f32 %v777_v56, %v938_v23  ;;  %v505_v23 = vld [vmem:[#allocation2 + $0x28] sm:$0xff] }
 0x124   : > { %v781_v15 = vpop.eup %780  ;;  %v491_v16 = vmul.f32 %v779_v13, %v941_v26 }
 0x125   : > { %v499_v17 = vmul.f32 %v781_v15, %v943_v33 }
 0x126   : > { %v517_v18 = vadd.f32 %v491_v16, %v490_v57 }
 0x127   : > { %v529_v19 = vadd.f32 %v499_v17, %v498_v14 }
 0x128   : > { %518 = vadd.xlane.f32.xlu0 %v517_v18 }
 0x12c   : > { %530 = vadd.xlane.f32.xlu0 %v529_v19 }
 0x19d   : > { %v510_v24 = vpop.xlane.xlu0 %509 }
 0x19e   : > { %v522_v25 = vpop.xlane.xlu1 %521  ;;  %v532_v29 = vadd.f32 %v510_v24, %v500_v20 }
 0x19f   : > { %v536_v30 = vadd.f32 %v522_v25, %v504_v22 }
 0x1a0   : > { %541 = vst.msk [vmem:[#allocation2] sm:$0xff] %vm204_vm2, %v532_v29 }
 0x1a1   : > { %545 = vst.msk [vmem:[#allocation2 + $0x20] sm:$0xff] %vm204_vm2, %v536_v30 }
 0x1a2   : > { %v513_v26 = vpop.xlane.xlu1 %512  ;;  %v525_v34 = vpop.xlane.xlu0 %524 }
 0x1a3   : > { %v533_v33 = vadd.f32 %v513_v26, %v501_v62  ;;  %v537_v35 = vadd.f32 %v525_v34, %v505_v23 }
 0x1a5   : > { %542 = vst.msk [vmem:[#allocation2 + $0x8] sm:$0xff] %vm204_vm2, %v533_v33  ;;  %546 = vst.msk [vmem:[#allocation2 + $0x28] sm:$0xff] %vm204_vm2, %v537_v35 }
 0x1a6   : > { %v528_v40 = vpop.xlane.xlu1 %527  ;;  %v516_v41 = vpop.xlane.xlu0 %515 }
 0x1a7   : > { %v552_v42 = vld [vmem:[#allocation2] sm:$0xff]  ;;  %v538_v45 = vadd.f32 %v528_v40, %v506_v36  ;;  %v534_v21 = vadd.f32 %v516_v41, %v502_v39 }
 0x1a8   : > { %v556_v46 = vld [vmem:[#allocation2 + $0x20] sm:$0xff]  ;;  %v560_v47 = vmul.f32 0.00390625, %v552_v42 }
 0x1a9   : > { %v564_v48 = vmul.f32 0.00390625, %v556_v46  ;;  %547 = vst.msk [vmem:[#allocation2 + $0x30] sm:$0xff] %vm204_vm2, %v538_v45  ;;  %543 = vst.msk [vmem:[#allocation2 + $0x10] sm:$0xff] %vm204_vm2, %v534_v21 }
 0x1aa   : > { %568 = vst.msk [vmem:[%s972_s24] sm:$0xff] %vm204_vm2, %v560_v47 }
 0x1ab   : > { %572 = vst.msk [vmem:[%s972_s24 + $0x20] sm:$0xff] %vm204_vm2, %v564_v48 }
 0x1ac   : > { %v553_v49 = vld [vmem:[#allocation2 + $0x8] sm:$0xff] }
 0x1ad   : > { %v557_v50 = vld [vmem:[#allocation2 + $0x28] sm:$0xff]  ;;  %v561_v51 = vmul.f32 0.00390625, %v553_v49 }
 0x1ae   : > { %v565_v54 = vmul.f32 0.00390625, %v557_v50 }
 0x1af   : > { %569 = vst.msk [vmem:[%s972_s24 + $0x8] sm:$0xff] %vm204_vm2, %v561_v51 }
 0x1b0   : > { %573 = vst.msk [vmem:[%s972_s24 + $0x28] sm:$0xff] %vm204_vm2, %v565_v54  ;;  %v558_v55 = vld [vmem:[#allocation2 + $0x30] sm:$0xff] }
 0x1b1   : > { %v554_v58 = vld [vmem:[#allocation2 + $0x10] sm:$0xff]  ;;  %v566_v59 = vmul.f32 0.00390625, %v558_v55 }
 0x1b2   : > { %v562_v27 = vmul.f32 0.00390625, %v554_v58 }
 0x1b3   : > { %574 = vst.msk [vmem:[%s972_s24 + $0x30] sm:$0xff] %vm204_vm2, %v566_v59 }
 0x1b4   : > { %570 = vst.msk [vmem:[%s972_s24 + $0x10] sm:$0xff] %vm204_vm2, %v562_v27 }
 0x1b5   : > { %v519_v61 = vpop.xlane.xlu0 %518 }
 0x1b6   : > { %v535_v63 = vadd.f32 %v519_v61, %v503_v60 }
 0x1b8   : > { %544 = vst.msk [vmem:[#allocation2 + $0x18] sm:$0xff] %vm204_vm2, %v535_v63 }
 0x1b9   : > { %v531_v0 = vpop.xlane.xlu0 %530 }
 0x1ba   : > { %v539_v31 = vadd.f32 %v531_v0, %v507_v28 }
 0x1bc   : > { %548 = vst.msk [vmem:[#allocation2 + $0x38] sm:$0xff] %vm204_vm2, %v539_v31 }
 0x1bf   : > { %v555_v1 = vld [vmem:[#allocation2 + $0x18] sm:$0xff] }
 0x1c0   : > { %v563_v32 = vmul.f32 0.00390625, %v555_v1 }
 0x1c2   : > { %571 = vst.msk [vmem:[%s972_s24 + $0x18] sm:$0xff] %vm204_vm2, %v563_v32 }
 0x1c3   : > { %v559_v2 = vld [vmem:[#allocation2 + $0x38] sm:$0xff] }
 0x1c4   : > { %v567_v3 = vmul.f32 0.00390625, %v559_v2 }
 0x1c6   : > { %575 = vst.msk [vmem:[%s972_s24 + $0x38] sm:$0xff] %vm204_vm2, %v567_v3 }
 0x1c7 PF: > { %s13_s14 = sadd.s32 1, %s804_s14   ;;  %s1007_s12 = smov %s800_s13 }
 0x1c8   : > { %p10_p5 = scmp.ge.s32.totalorder %s13_s14, 4   ;;  %s1008_s13 = smov %s1010_s15 }
 0x1ca   :  { %12 = sbr.rel (!%p10_p5) target bundleno = 2 (0x2), region = 70 }

</bundles_post_ra>
